<compile_context>
chip_gen: v5e
topology: v5e:2x2
jax: 0.10.0
libtpu: 0.0.40
codegen_flags: <defaults>
</compile_context>

<pallas_src>
import numpy as np
import jax
import jax.numpy as jnp
from jax.experimental import pallas as pl
from jax.experimental.pallas import tpu as pltpu

# FP3 quantization levels from LearnableFPActivation(precision_bits=3) (sorted, unique).
FP3_INIT_VALS = [-1.0, -0.25, 0.0, 0.25, 0.5, 1.0, 2.0, 4.0]

# Rows (lanes) per tile: (W=16, 32768) f32 = 2 MiB per buffer; in+out double-buffered = 8 MiB.
MAX_TILE_R = 32768


def _make_static_kernel(start_level, chain):
    """Quantization levels baked in as immediates; chain pre-pruned for s in (0, 1]."""

    def kernel(x_ref, o_ref):
        # x_ref/o_ref: VMEM [W, TILE_R]; rows on lanes, softmax over sublane axis 0.
        x = x_ref[...].astype(jnp.float32)
        m = jnp.max(x, axis=0, keepdims=True)
        e = jnp.exp(x - m)
        denom = jnp.sum(e, axis=0, keepdims=True)          # (1, TILE_R), always > 0
        # Nearest-level quantization of s = e/denom as a midpoint threshold chain, with the
        # divide folded into the compare:  s > mid  <=>  e > mid*denom.
        out = jnp.full(e.shape, start_level, dtype=jnp.float32)
        for mid, hi in chain:                              # unrolled: 3 cmp + 3 select (FP3)
            out = jnp.where(e > mid * denom, hi, out)
        o_ref[...] = out.astype(o_ref.dtype)

    return kernel


def _make_general_kernel(n_vals):
    """Levels / midpoints read from SMEM (learnable / traced fp_values)."""

    def kernel(vals_ref, mids_ref, x_ref, o_ref):
        x = x_ref[...].astype(jnp.float32)
        m = jnp.max(x, axis=0, keepdims=True)
        e = jnp.exp(x - m)
        denom = jnp.sum(e, axis=0, keepdims=True)
        out = jnp.full(e.shape, vals_ref[0], dtype=jnp.float32)
        for i in range(n_vals - 1):                        # unrolled at trace time
            out = jnp.where(e > mids_ref[i] * denom, vals_ref[i + 1], out)
        o_ref[...] = out.astype(o_ref.dtype)

    return kernel


def _choose_tile(rows):
    """Rows per grid step: big tiles to amortize per-step overhead, >=2 steps when there is
    enough work so the 'parallel' axis spans both v7x TensorCores."""
    if rows <= 1024:
        return rows, 1                                     # single full block (no 128 rule)
    tile = min(MAX_TILE_R, max(128, (rows // 256) * 128))  # multiple of 128, >=2 steps
    return tile, pl.cdiv(rows, tile)


def fp3_softmax(x, fp_values, dim=-1):
    """softmax(x, dim) followed by FP3 nearest-level quantization (forward pass)."""
    if dim not in (-1, x.ndim - 1):
        x = jnp.moveaxis(x, dim, -1)

    orig_shape = x.shape
    W = orig_shape[-1]
    rows = int(np.prod(orig_shape[:-1])) if len(orig_shape) > 1 else 1
    tile_r, grid_n = _choose_tile(rows)

    # Lane-dense layout for the kernel: flattened rows -> lane axis, W -> sublanes.
    xt = jnp.transpose(x.reshape(rows, W))                 # (W, rows)

    x_spec = pl.BlockSpec((W, tile_r), lambda i: (0, i))
    o_spec = pl.BlockSpec((W, tile_r), lambda i: (0, i))
    cparams = pltpu.CompilerParams(dimension_semantics=("parallel",))
    out_sds = jax.ShapeDtypeStruct((W, rows), x.dtype)

    try:
        vals_np = np.sort(np.asarray(fp_values, dtype=np.float32))
        concrete = True
    except Exception:                                      # traced fp_values (under jit/grad)
        concrete = False

    if concrete:
        # Bake levels/midpoints as immediates; prune the chain with the softmax range (0, 1]:
        # midpoints < 0 always fire (e >= 0 > mid*denom), midpoints >= 1 never fire.
        mids_np = 0.5 * (vals_np[:-1] + vals_np[1:])
        lo = int(np.sum(mids_np < 0.0))
        hi = int(np.sum(mids_np < 1.0))
        start_level = float(vals_np[lo])
        chain = [(float(mids_np[i]), float(vals_np[i + 1])) for i in range(lo, hi)]
        out_t = pl.pallas_call(
            _make_static_kernel(start_level, chain),
            out_shape=out_sds,
            grid=(grid_n,),
            in_specs=[x_spec],
            out_specs=o_spec,
            compiler_params=cparams,
        )(xt)
    else:
        vals = jnp.sort(fp_values.astype(jnp.float32))     # matches torch.sort in forward
        mids = 0.5 * (vals[:-1] + vals[1:])
        out_t = pl.pallas_call(
            _make_general_kernel(int(fp_values.shape[0])),
            out_shape=out_sds,
            grid=(grid_n,),
            in_specs=[
                pl.BlockSpec(memory_space=pltpu.MemorySpace.SMEM),   # levels (scalars)
                pl.BlockSpec(memory_space=pltpu.MemorySpace.SMEM),   # midpoints (scalars)
                x_spec,
            ],
            out_specs=o_spec,
            compiler_params=cparams,
        )(vals, mids, xt)

    out = jnp.transpose(out_t).reshape(orig_shape)
    if dim not in (-1, len(orig_shape) - 1):
        out = jnp.moveaxis(out, -1, dim)
    return out


def _reference(x, fp_values):
    """Pure-JAX reference matching the PyTorch forward (softmax + STEQuantize)."""
    vals = jnp.sort(fp_values.astype(jnp.float32))
    s = jax.nn.softmax(x.astype(jnp.float32), axis=-1)
    idx = jnp.searchsorted(vals, s, side="left")
    idx = jnp.clip(idx, 1, vals.shape[0] - 1)
    high = vals[idx]
    low = vals[idx - 1]
    return jnp.where(jnp.abs(s - low) <= jnp.abs(s - high), low, high).astype(x.dtype)


if __name__ == "__main__":
    key = jax.random.PRNGKey(0)
    # NCHW-like input: batch=2, channels=4, spatial 16x16 (softmax over the last dim, W=16).
    x = jax.random.normal(key, (2, 4, 16, 16), dtype=jnp.float32)
    fp_values = jnp.array(FP3_INIT_VALS, dtype=jnp.float32)   # LearnableFPActivation(3) init

    ref = _reference(x, fp_values)

    # Static path: levels concrete at trace time -> baked + pruned threshold chain.
    out = jax.block_until_ready(fp3_softmax(x, fp_values))
    assert out.shape == x.shape and out.dtype == x.dtype
    np.testing.assert_allclose(np.asarray(out), np.asarray(ref), atol=1e-6, rtol=0)

    # General path: fp_values traced (learnable parameter under jit) -> SMEM chain.
    out_j = jax.block_until_ready(jax.jit(fp3_softmax)(x, fp_values))
    np.testing.assert_allclose(np.asarray(out_j), np.asarray(ref), atol=1e-6, rtol=0)

    print("KERNEL_OK")
</pallas_src>

<mosaic_0001>
module attributes {stable_mosaic.version = 11 : i64} {
  func.func @kernel(%arg0: i32, %arg1: memref<16x128xf32, #tpu.memory_space<vmem>>, %arg2: memref<16x128xf32, #tpu.memory_space<vmem>>) attributes {dimension_semantics = [#tpu.dimension_semantics<parallel>], iteration_bounds = array<i64: 1>, scalar_prefetch = 0 : i64, scratch_operands = 0 : i64, tpu.core_type = #tpu.core_type<tc>, window_params = [{transform_indices = @transform_0, window_bounds = array<i64: 16, 128>}, {transform_indices = @transform_1, window_bounds = array<i64: 16, 128>}]} {
    %c0 = arith.constant 0 : index
    %c0_0 = arith.constant 0 : index
    %0 = vector.load %arg1[%c0, %c0_0] : memref<16x128xf32, #tpu.memory_space<vmem>>, vector<16x128xf32>
    %cst = arith.constant dense<0xFF800000> : vector<128xf32>
    %1 = vector.multi_reduction <maximumf>, %0, %cst [0] : vector<16x128xf32> to vector<128xf32>
    %2 = vector.shape_cast %1 : vector<128xf32> to vector<1x128xf32>
    %3 = vector.broadcast %2 : vector<1x128xf32> to vector<16x128xf32>
    %4 = arith.subf %0, %3 : vector<16x128xf32>
    %5 = math.exp %4 : vector<16x128xf32>
    %cst_1 = arith.constant dense<0.000000e+00> : vector<128xf32>
    %6 = vector.multi_reduction <add>, %5, %cst_1 [0] : vector<16x128xf32> to vector<128xf32>
    %7 = vector.shape_cast %6 : vector<128xf32> to vector<1x128xf32>
    %cst_2 = arith.constant 0.000000e+00 : f32
    %8 = vector.broadcast %cst_2 : f32 to vector<16x128xf32>
    %cst_3 = arith.constant 1.250000e-01 : f32
    %9 = vector.broadcast %cst_3 : f32 to vector<1x128xf32>
    %10 = arith.mulf %9, %7 : vector<1x128xf32>
    %11 = vector.broadcast %10 : vector<1x128xf32> to vector<16x128xf32>
    %12 = arith.cmpf ogt, %5, %11 : vector<16x128xf32>
    %cst_4 = arith.constant 2.500000e-01 : f32
    %13 = vector.broadcast %cst_4 : f32 to vector<16x128xf32>
    %14 = arith.select %12, %13, %8 : vector<16x128xi1>, vector<16x128xf32>
    %cst_5 = arith.constant 3.750000e-01 : f32
    %15 = vector.broadcast %cst_5 : f32 to vector<1x128xf32>
    %16 = arith.mulf %15, %7 : vector<1x128xf32>
    %17 = vector.broadcast %16 : vector<1x128xf32> to vector<16x128xf32>
    %18 = arith.cmpf ogt, %5, %17 : vector<16x128xf32>
    %cst_6 = arith.constant 5.000000e-01 : f32
    %19 = vector.broadcast %cst_6 : f32 to vector<16x128xf32>
    %20 = arith.select %18, %19, %14 : vector<16x128xi1>, vector<16x128xf32>
    %cst_7 = arith.constant 7.500000e-01 : f32
    %21 = vector.broadcast %cst_7 : f32 to vector<1x128xf32>
    %22 = arith.mulf %21, %7 : vector<1x128xf32>
    %23 = vector.broadcast %22 : vector<1x128xf32> to vector<16x128xf32>
    %24 = arith.cmpf ogt, %5, %23 : vector<16x128xf32>
    %cst_8 = arith.constant 1.000000e+00 : f32
    %25 = vector.broadcast %cst_8 : f32 to vector<16x128xf32>
    %26 = arith.select %24, %25, %20 : vector<16x128xi1>, vector<16x128xf32>
    %c0_9 = arith.constant 0 : index
    %c0_10 = arith.constant 0 : index
    %27 = vector.load %arg2[%c0_9, %c0_10] : memref<16x128xf32, #tpu.memory_space<vmem>>, vector<16x128xf32>
    tpu.vector_store %arg2[%c0_9, %c0_10], %26 {strides = array<i32>} : memref<16x128xf32, #tpu.memory_space<vmem>>, vector<16x128xf32>,
    return
  }
  func.func @transform_0(%arg0: i32) -> (i32, i32) {
    %c0_i32 = arith.constant 0 : i32
    %c0_i32_0 = arith.constant 0 : i32
    return %c0_i32, %arg0 : i32, i32
  }
  func.func @transform_1(%arg0: i32) -> (i32, i32) {
    %c0_i32 = arith.constant 0 : i32
    %c0_i32_0 = arith.constant 0 : i32
    return %c0_i32, %arg0 : i32, i32
  }
}

</mosaic_0001>

<bundles_post_ra>
// kernel: tpu_custom_call.1
= control target key start
LH: loop header
LB: loop body
LE: loop exit
PB: predicated region body
PF: predicated region fallthrough
CT: control target
= control target key end

     0   :  { %6 = vsyncpa [#allocation3], 0  ;;  %s171_s0 = inlined_call_operand.hbm [shape: f32[16,128], index: 0, kind: input, shape index: {}]   ;;  %s172_s1 = inlined_call_operand.hbm [shape: f32[16,128], index: 1, kind: output, shape index: {}]  }
   0x1   :  { %7 = vsyncpa [#allocation4], 0  ;;  %s12_s8 = sshll.u32 %s171_s0, 4  ;;  %s144_s9 = smov [#allocation2]   ;;  %s13_s8 = int_to_ptr.hbm [resolvable:$true] %s12_s8 }
   0x2   :  { %s14_s10 = sshll.u32 %s144_s9, 4  ;;  %s145_s11 = smov 128   ;;  %s15_s10 = int_to_ptr.vmem [resolvable:$true] %s14_s10 }
   0x3   :  { %s146_s12 = smov 8  }
   0x4   :  { %20 = dma.hbm_to_vmem [thread:$0]  %s13_s8, 256, %s15_s10, [#allocation3], %s145_s11, %s145_s11, %s146_s12  }
   0x5   :  { %140 = dma.done.wait [#allocation3], 256  }
   0x6   :  { %141 = vsyncadd [#allocation3], 4294967040  ;;  %v25_v0 = vld [vmem:[#allocation2] sm:$0xff]  ;;  %v26_v1 = vld [vmem:[#allocation2 + $0x8] sm:$0xff]  ;;  %s147_s0 = smov [#allocation5]   ;;  %s70_s16 = sshll.u32 %s172_s1, 4  ;;  %s71_s16 = int_to_ptr.hbm [resolvable:$true] %s70_s16 }
   0x7   :  { %v27_v2 = vmax.f32 %v25_v0, %v26_v1  ;;  %s68_s13 = sshll.u32 %s147_s0, 4  ;;  %v148_v25 = vmov 0.0   ;;  %s69_s13 = int_to_ptr.vmem [resolvable:$true] %s68_s13 }
   0x9   :  { %v28_v3 = vrot.slane %v27_v2, 4 }
   0xb   :  { %v29_v4 = vmax.f32 %v27_v2, %v28_v3 }
   0xd   :  { %v30_v5 = vrot.slane %v29_v4, 2 }
   0xf   :  { %v31_v6 = vmax.f32 %v29_v4, %v30_v5 }
  0x11   :  { %v32_v7 = vrot.slane %v31_v6, 1 }
  0x13   :  { %v33_v8 = vmax.f32 %v31_v6, %v32_v7 }
  0x15   :  { %v34_v9 = vsub.f32 %v25_v0, %v33_v8  ;;  %v35_v10 = vsub.f32 %v26_v1, %v33_v8 }
  0x17   :  { %v36_v11 = vmul.f32 1.442695, %v34_v9  ;;  %v38_v12 = vmul.f32 1.442695, %v35_v10 }
  0x19   :  { %88 = vpow2.f32 %v36_v11 }
  0x1a   :  { %90 = vpow2.f32 %v38_v12 }
  0x1f   :  { %v89_v13 = vpop.eup %88 }
  0x20   :  { %v91_v14 = vpop.eup %90 }
  0x21   :  { %v40_v15 = vadd.f32 %v91_v14, %v89_v13 }
  0x23   :  { %v41_v16 = vrot.slane %v40_v15, 4 }
  0x25   :  { %v42_v17 = vadd.f32 %v41_v16, %v40_v15 }
  0x27   :  { %v43_v18 = vrot.slane %v42_v17, 2 }
  0x29   :  { %v44_v19 = vadd.f32 %v43_v18, %v42_v17 }
  0x2b   :  { %v45_v20 = vrot.slane %v44_v19, 1 }
  0x2d   :  { %v46_v21 = vadd.f32 %v45_v20, %v44_v19 }
  0x2f   :  { %v47_v22 = vmul.f32 0.125, %v46_v21  ;;  %v52_v23 = vmul.f32 0.375, %v46_v21  ;;  %v57_v24 = vmul.f32 0.75, %v46_v21 }
  0x31   :  { %vm48_vm0 = vcmp.gt.f32.partialorder %v89_v13, %v47_v22  ;;  %vm53_vm1 = vcmp.gt.f32.partialorder %v89_v13, %v52_v23  ;;  %vm58_vm2 = vcmp.gt.f32.partialorder %v89_v13, %v57_v24  ;;  %vm49_vm3 = vcmp.gt.f32.partialorder %v91_v14, %v47_v22 }
  0x32   :  { %v50_v26 = vsel %vm48_vm0, 0.25, %v148_v25  ;;  %v51_v27 = vsel %vm49_vm3, 0.25, %v148_v25  ;;  %vm54_vm4 = vcmp.gt.f32.partialorder %v91_v14, %v52_v23  ;;  %vm59_vm5 = vcmp.gt.f32.partialorder %v91_v14, %v57_v24 }
  0x33   :  { %v55_v28 = vsel %vm53_vm1, 0.5, %v50_v26  ;;  %v56_v29 = vsel %vm54_vm4, 0.5, %v51_v27 }
  0x34   :  { %v60_v30 = vsel %vm58_vm2, 1.0, %v55_v28  ;;  %v61_v31 = vsel %vm59_vm5, 1.0, %v56_v29 }
  0x35   :  { %62 = vst [vmem:[#allocation5] sm:$0xff] %v60_v30 }
  0x36   :  { %63 = vst [vmem:[#allocation5 + $0x8] sm:$0xff] %v61_v31 }
  0x37   :  { %76 = dma.vmem_to_hbm [thread:$0]  %s69_s13, 256, %s71_s16, [#allocation4], %s145_s11, %s145_s11, %s146_s12  }
  0x38   :  { %142 = dma.done.wait [#allocation4], 256  }
  0x39   :  { %143 = vsyncadd [#allocation4], 4294967040 }
  0x3a   :  { %81 = vsyncpa [#allocation3], 1 }
  0x3b   :  { %82 = vsyncpa [#allocation4], 1 }

</bundles_post_ra>
